<compile_context>
chip_gen: v7x
topology: tpu7x:2x2x1
jax: 0.10.0
libtpu: 0.0.40
codegen_flags: <defaults>
</compile_context>

<pallas_src>
import jax
import jax.numpy as jnp
from jax.experimental import pallas as pl
from jax.experimental.pallas import tpu as pltpu

_LANE = 128
_SUBLANE = 8


def _round_up(x, m):
    return ((x + m - 1) // m) * m


def _head_kernel(x_ref, w1_ref, b1_ref, w2_ref, b2_ref, o_ref):
    # x_ref : (TM, 3H)      original dtype - streamed row tile of tokens
    # w1_ref: (3H, Hp)      bf16 - dense weight (hidden zero-padded to 128), resident
    # b1_ref: (1, Hp)       f32  - resident
    # w2_ref: (Hp, Lp)      bf16 - out_proj weight zero-padded to lane width, resident
    # b2_ref: (1, Lp)       f32  - resident
    # o_ref : (TM, L)       f32  - narrow logits tile (only num_labels lanes stored)
    num_labels = o_ref.shape[-1]
    xb = x_ref[...].astype(jnp.bfloat16)                       # in-kernel cast (VPU)
    h = jnp.dot(xb, w1_ref[...], preferred_element_type=jnp.float32)
    h = jnp.tanh(h + b1_ref[...])                              # f32 elementwise (v5e-safe)
    out = jnp.dot(h.astype(w2_ref.dtype), w2_ref[...],
                  preferred_element_type=jnp.float32)
    out = out + b2_ref[...]
    o_ref[...] = out[:, :num_labels].astype(o_ref.dtype)       # narrow masked store


def edge_classification_head(features, w_dense, b_dense, w_out, b_out,
                             *, row_tile=1024):
    """Fused dense -> tanh -> out_proj head (eval mode; dropout = identity).

    features: [..., 3*hidden]
    w_dense : [3*hidden, hidden]   (pre-transposed vs. PyTorch nn.Linear)
    b_dense : [hidden]
    w_out   : [hidden, num_labels] (pre-transposed vs. PyTorch nn.Linear)
    b_out   : [num_labels]
    returns : [..., num_labels]  (float32 logits, PyTorch-style)
    """
    *lead, in_dim = features.shape
    hidden = w_dense.shape[1]
    num_labels = w_out.shape[1]

    x = features.reshape(-1, in_dim)
    m = x.shape[0]
    x_bytes = x.dtype.itemsize

    # Lane-dense padded widths for the in-kernel compute. Only the (tiny)
    # weights/biases are padded; the streamed feature tensor is used as-is.
    h_pad = _round_up(max(hidden, _LANE), _LANE)
    l_pad = _round_up(max(num_labels, _LANE), _LANE)

    # ---- generation-aware VMEM budget -------------------------------------
    try:
        vmem_cap = int(pltpu.get_tpu_info().vmem_capacity_bytes)
    except Exception:
        vmem_cap = 64 * 1024 * 1024            # conservative (v7x per-TC)
    vmem_budget = min(int(0.75 * vmem_cap), 100 * 1024 * 1024)

    # ---- row tiling ---------------------------------------------------------
    m8 = _round_up(m, _SUBLANE)
    tm = min(_round_up(max(row_tile, _SUBLANE), _SUBLANE), m8)
    if m8 >= 2 * _SUBLANE:
        # Keep >= 2 grid steps so dimension_semantics=("parallel",) can shard
        # the M axis across v7x's two TensorCores.
        tm = min(tm, _round_up(pl.cdiv(m8, 2), _SUBLANE))
    tm = max(tm, _SUBLANE)

    def vmem_need(t):
        return (2 * t * in_dim * x_bytes          # streamed feature tiles (2 bufs)
                + 2 * t * num_labels * 4          # streamed logit tiles (2 bufs)
                + 2 * in_dim * h_pad * 2          # w1 (Pallas double-buffers residents)
                + 2 * h_pad * 4                   # b1
                + 2 * h_pad * l_pad * 2           # w2
                + 2 * l_pad * 4                   # b2
                + t * in_dim * 2                  # in-kernel bf16 copy of x
                + t * h_pad * (4 + 2)             # f32 h + bf16 h
                + t * l_pad * 4)                  # f32 out before the narrow store

    while tm > _SUBLANE and vmem_need(tm) > vmem_budget:
        tm = max(_SUBLANE, _round_up(tm // 2, _SUBLANE))

    m_pad = _round_up(m, tm)
    grid = (m_pad // tm,)

    # ---- operand prep (weights/biases only; features untouched unless a
    #      small M-tail pad is unavoidable) ----------------------------------
    if m_pad != m:
        x = jnp.pad(x, ((0, m_pad - m), (0, 0)))
    w1 = jnp.pad(w_dense, ((0, 0), (0, h_pad - hidden))).astype(jnp.bfloat16)
    b1 = jnp.pad(b_dense, (0, h_pad - hidden)).reshape(1, h_pad).astype(jnp.float32)
    w2 = jnp.pad(w_out, ((0, h_pad - hidden), (0, l_pad - num_labels))).astype(jnp.bfloat16)
    b2 = jnp.pad(b_out, (0, l_pad - num_labels)).reshape(1, l_pad).astype(jnp.float32)

    cost = pl.CostEstimate(
        flops=2 * m_pad * (in_dim * h_pad + h_pad * l_pad),
        transcendentals=m_pad * h_pad,
        bytes_accessed=(m_pad * in_dim * x_bytes + m_pad * num_labels * 4
                        + in_dim * h_pad * 2 + h_pad * l_pad * 2
                        + (h_pad + l_pad) * 4),
    )

    vmem_limit = int(min(vmem_budget, max(4 * 1024 * 1024, 2 * vmem_need(tm))))

    out_full = pl.pallas_call(
        _head_kernel,
        out_shape=jax.ShapeDtypeStruct((m_pad, num_labels), jnp.float32),
        grid_spec=pltpu.PrefetchScalarGridSpec(
            num_scalar_prefetch=0,
            grid=grid,
            in_specs=[
                pl.BlockSpec((tm, in_dim), lambda i: (i, 0)),      # streamed rows
                pl.BlockSpec((in_dim, h_pad), lambda i: (0, 0)),   # resident
                pl.BlockSpec((1, h_pad), lambda i: (0, 0)),        # resident
                pl.BlockSpec((h_pad, l_pad), lambda i: (0, 0)),    # resident
                pl.BlockSpec((1, l_pad), lambda i: (0, 0)),        # resident
            ],
            out_specs=pl.BlockSpec((tm, num_labels), lambda i: (i, 0)),
        ),
        compiler_params=pltpu.CompilerParams(
            dimension_semantics=("parallel",),   # shards M across v7x's 2 TCs
            vmem_limit_bytes=vmem_limit,
        ),
        cost_estimate=cost,
    )(x, w1, b1, w2, b2)

    out = out_full[:m] if m_pad != m else out_full
    return out.reshape(*lead, num_labels)


def reference(features, w_dense, b_dense, w_out, b_out):
    h = jnp.tanh(features @ w_dense + b_dense)
    return h @ w_out + b_out


if __name__ == "__main__":
    # Config: hidden_size=32, num_labels=4, latent=False, batch=2, seq=8.
    hidden = 32
    num_labels = 4
    batch, seq = 2, 8
    in_dim = 3 * hidden

    key = jax.random.PRNGKey(0)
    k_feat, k_w1, k_b1, k_w2, k_b2 = jax.random.split(key, 5)

    # features: [batch, seq, 3*hidden]
    features = jax.random.normal(k_feat, (batch, seq, in_dim), dtype=jnp.float32)

    # Deterministic PyTorch-Linear-style init (uniform +-1/sqrt(fan_in)),
    # stored pre-transposed as (in, out).
    bound1 = 1.0 / jnp.sqrt(jnp.float32(in_dim))
    w_dense = jax.random.uniform(k_w1, (in_dim, hidden), jnp.float32, -bound1, bound1)
    b_dense = jax.random.uniform(k_b1, (hidden,), jnp.float32, -bound1, bound1)

    bound2 = 1.0 / jnp.sqrt(jnp.float32(hidden))
    w_out = jax.random.uniform(k_w2, (hidden, num_labels), jnp.float32, -bound2, bound2)
    b_out = jax.random.uniform(k_b2, (num_labels,), jnp.float32, -bound2, bound2)

    # TODO(synk): dropout is identity in eval mode; training-mode dropout masks
    # (pltpu.prng_random_bits) are not implemented here.

    out = edge_classification_head(features, w_dense, b_dense, w_out, b_out)
    out = jax.block_until_ready(out)

    ref = reference(features, w_dense, b_dense, w_out, b_out)
    assert out.shape == (batch, seq, num_labels), out.shape
    assert out.dtype == jnp.float32, out.dtype
    # MXU operands are bf16 (f32 accumulation), so compare against the pure-f32
    # reference with a correspondingly looser tolerance.
    max_err = float(jnp.max(jnp.abs(out - ref)))
    assert jnp.allclose(out, ref, atol=2e-2, rtol=2e-2), f"mismatch vs ref, max_err={max_err}"

    print("KERNEL_OK")
</pallas_src>

<mosaic_0001>
module attributes {stable_mosaic.version = 11 : i64} {
  func.func @_head_kernel(%arg0: i32, %arg1: memref<8x96xf32, #tpu.memory_space<vmem>>, %arg2: memref<96x128xbf16, #tpu.memory_space<vmem>>, %arg3: memref<1x128xf32, #tpu.memory_space<vmem>>, %arg4: memref<128x128xbf16, #tpu.memory_space<vmem>>, %arg5: memref<1x128xf32, #tpu.memory_space<vmem>>, %arg6: memref<8x4xf32, #tpu.memory_space<vmem>>) attributes {dimension_semantics = [#tpu.dimension_semantics<parallel>], iteration_bounds = array<i64: 2>, scalar_prefetch = 0 : i64, scratch_operands = 0 : i64, tpu.core_type = #tpu.core_type<tc>, window_params = [{transform_indices = @transform_0, window_bounds = array<i64: 8, 96>}, {pipeline_mode = #tpu.pipeline_mode<synchronous>, transform_indices = @transform_1, window_bounds = array<i64: 96, 128>}, {pipeline_mode = #tpu.pipeline_mode<synchronous>, transform_indices = @transform_2, window_bounds = array<i64: 1, 128>}, {pipeline_mode = #tpu.pipeline_mode<synchronous>, transform_indices = @transform_3, window_bounds = array<i64: 128, 128>}, {pipeline_mode = #tpu.pipeline_mode<synchronous>, transform_indices = @transform_4, window_bounds = array<i64: 1, 128>}, {transform_indices = @transform_5, window_bounds = array<i64: 8, 4>}]} {
    %c0 = arith.constant 0 : index
    %c0_0 = arith.constant 0 : index
    %0 = vector.load %arg1[%c0, %c0_0] : memref<8x96xf32, #tpu.memory_space<vmem>>, vector<8x96xf32>
    %1 = arith.truncf %0 : vector<8x96xf32> to vector<8x96xbf16>
    %c0_1 = arith.constant 0 : index
    %c0_2 = arith.constant 0 : index
    %2 = vector.load %arg2[%c0_1, %c0_2] : memref<96x128xbf16, #tpu.memory_space<vmem>>, vector<96x128xbf16>
    %cst = arith.constant dense<0.000000e+00> : vector<8x128xf32>
    %3 = tpu.matmul %1, %2, %cst {dimension_numbers = #tpu.dot_dimension_numbers<[1], [0], [0], [1], [0, 0, 1, 1], [], []>} : vector<8x96xbf16>, vector<96x128xbf16>, vector<8x128xf32> -> vector<8x128xf32>
    %c0_3 = arith.constant 0 : index
    %c0_4 = arith.constant 0 : index
    %4 = vector.load %arg3[%c0_3, %c0_4] : memref<1x128xf32, #tpu.memory_space<vmem>>, vector<1x128xf32>
    %5 = vector.broadcast %4 : vector<1x128xf32> to vector<8x128xf32>
    %6 = arith.addf %3, %5 : vector<8x128xf32>
    %7 = math.tanh %6 : vector<8x128xf32>
    %8 = arith.truncf %7 : vector<8x128xf32> to vector<8x128xbf16>
    %c0_5 = arith.constant 0 : index
    %c0_6 = arith.constant 0 : index
    %9 = vector.load %arg4[%c0_5, %c0_6] : memref<128x128xbf16, #tpu.memory_space<vmem>>, vector<128x128xbf16>
    %cst_7 = arith.constant dense<0.000000e+00> : vector<8x128xf32>
    %10 = tpu.matmul %8, %9, %cst_7 {dimension_numbers = #tpu.dot_dimension_numbers<[1], [0], [0], [1], [0, 0, 1, 1], [], []>} : vector<8x128xbf16>, vector<128x128xbf16>, vector<8x128xf32> -> vector<8x128xf32>
    %c0_8 = arith.constant 0 : index
    %c0_9 = arith.constant 0 : index
    %11 = vector.load %arg5[%c0_8, %c0_9] : memref<1x128xf32, #tpu.memory_space<vmem>>, vector<1x128xf32>
    %12 = vector.broadcast %11 : vector<1x128xf32> to vector<8x128xf32>
    %13 = arith.addf %10, %12 : vector<8x128xf32>
    %14 = vector.extract_strided_slice %13 {offsets = [0, 0], sizes = [8, 4], strides = [1, 1]} : vector<8x128xf32> to vector<8x4xf32>
    %c0_10 = arith.constant 0 : index
    %c0_11 = arith.constant 0 : index
    %15 = vector.load %arg6[%c0_10, %c0_11] : memref<8x4xf32, #tpu.memory_space<vmem>>, vector<8x4xf32>
    tpu.vector_store %arg6[%c0_10, %c0_11], %14 {strides = array<i32>} : memref<8x4xf32, #tpu.memory_space<vmem>>, vector<8x4xf32>,
    return
  }
  func.func @transform_0(%arg0: i32) -> (i32, i32) {
    %c0_i32 = arith.constant 0 : i32
    %c0_i32_0 = arith.constant 0 : i32
    return %arg0, %c0_i32 : i32, i32
  }
  func.func @transform_1(%arg0: i32) -> (i32, i32) {
    %c0_i32 = arith.constant 0 : i32
    %c0_i32_0 = arith.constant 0 : i32
    %c0_i32_1 = arith.constant 0 : i32
    return %c0_i32, %c0_i32_0 : i32, i32
  }
  func.func @transform_2(%arg0: i32) -> (i32, i32) {
    %c0_i32 = arith.constant 0 : i32
    %c0_i32_0 = arith.constant 0 : i32
    %c0_i32_1 = arith.constant 0 : i32
    return %c0_i32, %c0_i32_0 : i32, i32
  }
  func.func @transform_3(%arg0: i32) -> (i32, i32) {
    %c0_i32 = arith.constant 0 : i32
    %c0_i32_0 = arith.constant 0 : i32
    %c0_i32_1 = arith.constant 0 : i32
    return %c0_i32, %c0_i32_0 : i32, i32
  }
  func.func @transform_4(%arg0: i32) -> (i32, i32) {
    %c0_i32 = arith.constant 0 : i32
    %c0_i32_0 = arith.constant 0 : i32
    %c0_i32_1 = arith.constant 0 : i32
    return %c0_i32, %c0_i32_0 : i32, i32
  }
  func.func @transform_5(%arg0: i32) -> (i32, i32) {
    %c0_i32 = arith.constant 0 : i32
    %c0_i32_0 = arith.constant 0 : i32
    return %arg0, %c0_i32 : i32, i32
  }
}

</mosaic_0001>

<bundles_post_ra>
// kernel: tpu_custom_call.1
= control target key start
LH: loop header
LB: loop body
LE: loop exit
PB: predicated region body
PF: predicated region fallthrough
CT: control target
= control target key end

     0   :  { %10 = vsyncpa [#allocation3], 0  ;;  %s1079_s0 = inlined_call_operand.hbm [shape: f32[16,96], index: 0, kind: input, shape index: {}]   ;;  %s1080_s1 = inlined_call_operand.hbm [shape: bf16[96,128], index: 1, kind: input, shape index: {}]   ;;  %s1081_s2 = inlined_call_operand.vmem [shape: f32[1,128], index: 2, kind: input, shape index: {}]   ;;  %s1082_s3 = inlined_call_operand.hbm [shape: bf16[128,128], index: 3, kind: input, shape index: {}]   ;;  %s1083_s4 = inlined_call_operand.vmem [shape: f32[1,128], index: 4, kind: input, shape index: {}]   ;;  %s1084_s5 = inlined_call_operand.vmem [shape: f32[16,4], index: 5, kind: output, shape index: {}]  }
   0x1   :  { %12 = vsyncpa [#allocation3 + $0x1], 0 }
   0x2   :  { %13 = vsyncpa [#allocation5], 0  ;;  %s896_s18 = smov 0   ;;  %s898_s19 = smov 0  }
   0x3   :  { %s900_s20 = smov 0   ;;  %s902_s21 = smov 0  }
   0x4 LB: > { %s915_s22 = sadd.s32 4294967295, %s857_s21   ;;  %p39_p0 = scmp.ne.s32.totalorder %s849_s19, %s845_s18  ;;  %s857_s21 = sphi %s902_s21, %s1099_s21   ;;  %s853_s20 = sphi %s900_s20, %s1098_s20   ;;  %s849_s19 = sphi %s898_s19, %s1097_s19   ;;  %s845_s18 = sphi %s896_s18, %s1096_s18  }
   0x5   : > { %p1085_p1 = scmp.eq.s32.totalorder %s915_s22, 0  ;;  %p571_p2 = scmp.ge.s32.totalorder %s857_s21, 1 }
   0x6   : > { %p160_p3 = scmp.lt.s32.totalorder %s857_s21, 3  ;;  %s859_s25 = smov [#allocation4]  }
   0x7   : > { %p923_p4 = por %p1085_p1, %p39_p0  ;;  %s172_s26 = sshll.u32 %s859_s25, 4  ;;  %s173_s26 = int_to_ptr.vmem [resolvable:$true] %s172_s26 }
   0x8   : > { %p927_p5 = pnand %p571_p2, %p160_p3  ;;  %s860_s28 = smov [#allocation6]  }
   0x9   : > { %s1088_s23 = scalar_select %p923_p4, 1, 0 }
   0xa   : > { %s1089_s24 = scalar_select %p927_p5, 1, 0 }
   0xb   : > { %p663_p6 = pneg %p927_p5  ;;  %s188_s29 = sshll.u32 %s860_s28, 4  ;;  %s939_s29 = int_to_ptr.vmem [resolvable:$true] %s188_s29 }
   0xc   : > { %s733_s7 = scalar_lea.hbm %s1080_s1, 768 }
   0xd   : > { %p935_p7 = pnand %p663_p6, %p1085_p1  ;;  %p734_p8 = scmp.ne.s32.totalorder %s1080_s1, %s733_s7 }
   0xe   : > { %p740_p12 = scmp.lt.u32.totalorder %s733_s7, %s1080_s1 }
   0xf   : > { %p735_p9 = pneg %p935_p7 }
  0x11   : > { %p736_p10 = pnand %p735_p9, %p734_p8 }
  0x13   : > { %p737_p11 = pneg %p736_p10 }
  0x15   : > { %p742_p13 = pnand %p740_p12, %p737_p11 }
  0x17   : > { %745 = shalt.err (!%p742_p13)
}
  0x18   : > { %s746_s12 = scalar_lea.vmem %s173_s26, 768  ;;  %p754_p6 = scmp.lt.s32.totalorder %s173_s26, %s173_s26 }
  0x19   : > { %p747_p0 = scmp.ne.s32.totalorder %s173_s26, %s746_s12  ;;  %p755_p1 = scmp.lt.s32.totalorder %s746_s12, %s746_s12 }
  0x1b   : > { %p749_p2 = pnand %p747_p0, %p735_p9  ;;  %p756_p4 = por %p755_p1, %p754_p6 }
  0x1d   : > { %p750_p3 = pneg %p749_p2 }
  0x1f   : > { %p757_p5 = pnand %p756_p4, %p750_p3 }
  0x21   : > { %760 = shalt.err (!%p757_p5)
}
  0x22   : > { %s861_s13 = smov 64   ;;  %s862_s14 = smov 4  }
  0x23   : > { %666 = dma.hbm_to_vmem [thread:$0]  (!%p935_p7), %s1080_s1, 768, %s173_s26, [#allocation5], %s861_s13, %s861_s13, %s862_s14  }
  0x24   : > { %s761_s25 = scalar_lea.hbm %s1082_s3, 1024 }
  0x25   : > { %p762_p8 = scmp.ne.s32.totalorder %s1082_s3, %s761_s25  ;;  %p768_p5 = scmp.lt.u32.totalorder %s761_s25, %s1082_s3 }
  0x27   : > { %p764_p1 = pnand %p762_p8, %p735_p9 }
  0x29   : > { %p765_p4 = pneg %p764_p1 }
  0x2b   : > { %p770_p10 = pnand %p768_p5, %p765_p4 }
  0x2d   : > { %773 = shalt.err (!%p770_p10)
}
  0x2e   : > { %s774_s26 = scalar_lea.vmem %s939_s29, 1024  ;;  %p782_p0 = scmp.lt.s32.totalorder %s939_s29, %s939_s29 }
  0x2f   : > { %p775_p11 = scmp.ne.s32.totalorder %s939_s29, %s774_s26  ;;  %p783_p2 = scmp.lt.s32.totalorder %s774_s26, %s774_s26 }
  0x31   : > { %p777_p12 = pnand %p775_p11, %p735_p9  ;;  %p784_p3 = por %p783_p2, %p782_p0 }
  0x33   : > { %p778_p13 = pneg %p777_p12 }
  0x35   : > { %p785_p6 = pnand %p784_p3, %p778_p13 }
  0x37   : > { %788 = shalt.err (!%p785_p6)
}
  0x38   : > { %669 = dma.hbm_to_vmem [thread:$0]  (!%p935_p7), %s1082_s3, 1024, %s939_s29, [#allocation5], %s861_s13, %s861_s13, %s862_s14  }
  0x39   : > { %s989_s10 = sadd.s32 1, %s857_s21   ;;  %s26_s11 = sadd.s32 1, %s853_s20 }
  0x3a   : > { %s23_s27 = ssub.s32 %s857_s21, %s989_s10  ;;  %p33_p9 = scmp.ne.s32.totalorder %s853_s20, %s849_s19 }
  0x3b   : > { %p24_p8 = scmp.eq.s32.totalorder %s23_s27, 0  ;;  %p34_p1 = scmp.eq.s32.totalorder %s857_s21, 0 }
  0x3c   : > { %p676_p4 = scmp.lt.s32.totalorder %s857_s21, 2  ;;  %s205_s12 = sand.u32 1, %s853_s20  }
  0x3d   : > { %s1000_s15 = scalar_select %p24_p8, %s853_s20, %s26_s11  }
  0x3e   : > { %p35_p5 = por %p34_p1, %p33_p9  ;;  %s575_s16 = sshll.u32 %s205_s12, 3 }
  0x3f   : > { %s576_s17 = sshll.u32 %s857_s21, 7  ;;  %s209_s29 = scalar_lea.vmem [#allocation2], %s575_s16 }
  0x40   : > { %s1006_s28 = scalar_lea.hbm %s1079_s0, %s576_s17  ;;  %s216_s13 = sshll.u32 %s209_s29, 4  ;;  %s1012_s13 = int_to_ptr.vmem [resolvable:$true] %s216_s13 }
  0x41   : > { %p1008_p7 = pnand %p676_p4, %p35_p5  ;;  %s206_s21 = scalar_lea.sflag [#allocation3], %s205_s12 }
  0x42   : > { %s789_s30 = scalar_lea.hbm %s1006_s28, 128  ;;  %s794_s26 = scalar_lea.hbm %s1079_s0, 256 }
  0x43   : > { %p790_p10 = scmp.ne.s32.totalorder %s1006_s28, %s789_s30  ;;  %p791_p11 = pneg %p1008_p7 }
  0x44   : > { %p795_p0 = scmp.lt.u32.totalorder %s1006_s28, %s1079_s0  ;;  %p796_p2 = scmp.lt.u32.totalorder %s794_s26, %s789_s30 }
  0x45   : > { %p792_p12 = pnand %p791_p11, %p790_p10  ;;  %p798_p6 = scmp.lt.u32.totalorder %s789_s30, %s1006_s28 }
  0x46   : > { %p797_p3 = por %p796_p2, %p795_p0 }
  0x47   : > { %p793_p13 = pneg %p792_p12 }
  0x48   : > { %p799_p9 = por %p798_p6, %p797_p3 }
  0x4a   : > { %p800_p8 = pnand %p799_p9, %p793_p13 }
  0x4c   : > { %803 = shalt.err (!%p800_p8)
}
  0x4d   : > { %s804_s11 = scalar_lea.vmem %s1012_s13, 128  ;;  %s863_s27 = smov [#allocation2]  }
  0x4e   : > { %p805_p1 = scmp.ne.s32.totalorder %s1012_s13, %s804_s11  ;;  %s809_s12 = sshll.u32 %s863_s27, 4  ;;  %s810_s12 = int_to_ptr.vmem [resolvable:$false] %s809_s12 }
  0x4f   : > { %s811_s16 = scalar_lea.vmem %s810_s12, 256  ;;  %p812_p10 = scmp.lt.s32.totalorder %s1012_s13, %s810_s12 }
  0x50   : > { %p807_p4 = pnand %p805_p1, %p791_p11  ;;  %p813_p12 = scmp.lt.s32.totalorder %s811_s16, %s804_s11 }
  0x52   : > { %p808_p5 = pneg %p807_p4  ;;  %p814_p0 = por %p813_p12, %p812_p10 }
  0x54   : > { %p815_p2 = pnand %p814_p0, %p808_p5 }
  0x56   : > { %818 = shalt.err (!%p815_p2)
}
  0x57   : > { %673 = dma.hbm_to_vmem [thread:$0]  (!%p1008_p7), %s1006_s28, 128, %s1012_s13, %s206_s21  }
  0x58   : > { %p1092_p13 = scmp.ne.s32.totalorder %s1089_s24, 0 }
  0x59   : > { %s227_s17 = sand.u32 (!%p1092_p13), 1, %s849_s19   ;;  %p1093_p11 = scmp.ne.s32.totalorder (!%p1092_p13), %s1088_s23, 0 }
  0x5a   : > { %225 = sbr.rel (%p1092_p13) target bundleno = 569 (0x239), region = 40  ;;  %s1042_s18 = sshll.u32 (!%p1092_p13), %s227_s17, 3 }
  0x5b   : > { %s228_s25 = scalar_lea.sflag (!%p1092_p13), [#allocation3], %s227_s17  ;;  %s231_s29 = scalar_lea.vmem (!%p1092_p13), [#allocation2], %s1042_s18 }
  0x61   : > { %836 = dma.done.wait (%p1093_p11), %s228_s25, 128  }
  0x62   : > { %838 = vsyncadd (%p1093_p11), %s228_s25, 4294967168  ;;  %p1094_p3 = scmp.eq.s32.totalorder %s915_s22, 0 }
  0x64   : > { %840 = dma.done.wait (%p1094_p3), [#allocation5], 1792   ;;  %p1095_p7 = pmov %p1094_p3 }
  0x65   : > { %v864_v0 = vmov 0.0   ;;  %vm865_vm0 = vmmov 0   ;;  %v717_v1 = vld [vmem:[#allocation4] sm:$0xff]   ;;  %v718_v2 = vld [vmem:[#allocation4 + $0x8] sm:$0xff]   ;;  %v719_v3 = vld [vmem:[#allocation4 + $0x10] sm:$0xff]   ;;  %vm327_vm1 = vcmask 785408  }
  0x66   : > { %842 = vsyncadd (%p1095_p7), [#allocation5], 4294965504  ;;  %617 = vmatprep.subr.bf16.mxu0 %v864_v0  ;;  %629 = vmatprep.mubr.msk.bf16.mxu0 %vm865_vm0, %v864_v0  ;;  %v723_v4 = vld [vmem:[#allocation6] sm:$0xff]   ;;  %v724_v5 = vld [vmem:[#allocation6 + $0x8] sm:$0xff]   ;;  %p265_p6 = scmp.lt.s32.totalorder %s915_s22, 1  ;;  %vm484_vm2 = vcmask 31744  }
  0x67   : > { %633 = vmatprep.subr.bf16.mxu1 %v864_v0  ;;  %649 = vmatprep.mubr.msk.bf16.mxu1 %vm865_vm0, %v864_v0  ;;  %v720_v6 = vld [vmem:[#allocation4 + $0x18] sm:$0xff]   ;;  %v725_v7 = vld [vmem:[#allocation6 + $0x10] sm:$0xff]   ;;  %v726_v9 = vld [vmem:[#allocation6 + $0x18] sm:$0xff]  }
  0x68   : > { %618 = vmatpush3.bf16.msra.mxu0 %v717_v1  ;;  %634 = vmatpush3.bf16.msra.mxu1 %v723_v4  ;;  %v721_v8 = vld [vmem:[#allocation4 + $0x20] sm:$0xff]   ;;  %v722_v10 = vld [vmem:[#allocation4 + $0x28] sm:$0xff]   ;;  %v270_v11 = vld [vmem:[%s231_s29] sm:$0xff]  ;;  %s1101_s22 = smov (!%p265_p6, %s915_s22), 1 }
  0x69   : > { %619 = vmatprep.subr.bf16.mxu0 %v864_v0  ;;  %635 = vmatprep.subr.bf16.mxu1 %v864_v0  ;;  %v271_v12 = vpack.c.bf16 %v270_v11, %v270_v11  ;;  %v727_v13 = vld [vmem:[#allocation6 + $0x20] sm:$0xff]   ;;  %v728_v14 = vld [vmem:[#allocation6 + $0x28] sm:$0xff]   ;;  %v729_v15 = vld [vmem:[#allocation6 + $0x30] sm:$0xff]   ;;  %s581_s28 = sshll.u32 %s1101_s22, 3 }
  0x6a   : > { %v730_v16 = vld [vmem:[#allocation6 + $0x38] sm:$0xff]   ;;  %v582_v17 = vld [vmem:[%s1081_s2] ss:$0 sm:$0xff]  ;;  %s268_s6 = scalar_lea.vmem %s1084_s5, %s581_s28 }
  0x6b   : > { %v590_v25 = vld [vmem:[%s1083_s4] ss:$0 sm:$0xff] }
  0x6c   : > { %620 = vmatpush3.bf16.msra.mxu0 %v718_v2  ;;  %636 = vmatpush3.bf16.msra.mxu1 %v724_v5 }
  0x6d   : > { %621 = vmatprep.subr.bf16.mxu0 %v864_v0  ;;  %637 = vmatprep.subr.bf16.mxu1 %v864_v0 }
  0x70   : > { %622 = vmatpush3.bf16.msra.mxu0 %v719_v3  ;;  %638 = vmatpush3.bf16.msra.mxu1 %v725_v7 }
  0x71   : > { %623 = vmatprep.subr.bf16.mxu0 %v864_v0  ;;  %639 = vmatprep.subr.bf16.mxu1 %v864_v0 }
  0x74   : > { %624 = vmatpush3.bf16.msra.mxu0 %v720_v6  ;;  %640 = vmatpush3.bf16.msra.mxu1 %v726_v9 }
  0x75   : > { %625 = vmatprep.subr.bf16.mxu0 %v864_v0  ;;  %641 = vmatprep.subr.bf16.mxu1 %v864_v0 }
  0x78   : > { %626 = vmatpush3.bf16.msra.mxu0 %v721_v8  ;;  %642 = vmatpush3.bf16.msra.mxu1 %v727_v13 }
  0x79   : > { %627 = vmatprep.subr.bf16.mxu0 %v864_v0  ;;  %643 = vmatprep.subr.bf16.mxu1 %v864_v0 }
  0x7c   : > { %628 = vmatpush3.bf16.msra.mxu0 %v722_v10  ;;  %644 = vmatpush3.bf16.msra.mxu1 %v728_v14 }
  0x7d   : > { %645 = vmatprep.subr.bf16.mxu1 %v864_v0 }
  0x7f   : > { %630 = vmatmul.mubr.msk.bf16.vlgmr.msra.gmra.mrb[0].mxu0 %vm327_vm1, %v271_v12 }
  0x80   : > { %646 = vmatpush3.bf16.msra.mxu1 %v729_v15 }
  0x81   : > { %647 = vmatprep.subr.bf16.mxu1 %v864_v0 }
  0x84   : > { %648 = vmatpush3.bf16.msra.mxu1 %v730_v16 }
 0x152   : > { %v365_v18 = vpop.f32.mrb[0].mxu0 }
 0x153   : > { %v366_v19 = vadd.f32 %v582_v17, %v365_v18  ;;  %v631_v20 = vpop.f32.mrb[1].mxu0 }
 0x154   : > { %v368_v21 = vpop.f32.mrb[2].mxu0 }
 0x155   : > { %731 = vtanh.f32 %v366_v19  ;;  %v632_v22 = vpop.f32.mrb[3].mxu0 }
 0x15f   : > { %v732_v23 = vpop.eup %731 }
 0x160   : > { %v372_v24 = vpack.c.bf16 %v732_v23, %v732_v23 }
 0x162   : > { %650 = vmatmul.mubr.bf16.vlgmr.msra.gmra.mrb[0].mxu1 %v372_v24 }
 0x235   : > { %v478_v26 = vpop.f32.mrb[0].mxu1 }
 0x236   : > { %v479_v27 = vadd.f32 %v590_v25, %v478_v26  ;;  %v651_v28 = vpop.f32.mrb[1].mxu1 }
 0x237   : > { %v481_v29 = vpop.f32.mrb[2].mxu1 }
 0x238   : > { %485 = vst.msk [vmem:[%s268_s6] sm:$0xff] %vm484_vm2, %v479_v27  ;;  %v652_v30 = vpop.f32.mrb[3].mxu1 }
 0x239 PF: > { %p16_p9 = scmp.ge.s32.totalorder %s989_s10, 4   ;;  %s1096_s18 = smov %s849_s19 }
 0x23a   : > { %s1097_s19 = smov %s853_s20  ;;  %s1098_s20 = smov %s1000_s15 }
 0x23b   : > { %s1099_s21 = smov %s989_s10  ;;  %18 = sbr.rel (!%p16_p9) target bundleno = 4 (0x4), region = 88 }
 0x242   :  { %505 = vsyncpa [#allocation3], 1 }
 0x243   :  { %507 = vsyncpa [#allocation3 + $0x1], 1 }
 0x244   :  { %508 = vsyncpa [#allocation5], 1 }

</bundles_post_ra>
